<compile_context>
chip_gen: v7x
topology: tpu7x:2x2x1
jax: 0.10.0
libtpu: 0.0.40
codegen_flags: <defaults>
</compile_context>

<pallas_src>
import math

import jax
import jax.numpy as jnp
from jax.experimental import pallas as pl
from jax.experimental.pallas import tpu as pltpu

# TODO(synk): config.margin is not available in the spec; use the common default of 2.0.
MARGIN = 2.0
EPS = 1e-6                    # F.pairwise_distance default eps (added to the difference)

_LANE = 128
_SUB = 8
_TARGET_ROW_LANES = 1024      # pack logical rows until a physical row is ~1024 lanes wide
_TARGET_TILE_BYTES = 4 * 1024 * 1024   # per-input tile target (2-8 MiB sweet spot)
_MAX_SPLITS = 2               # v7x has 2 TensorCores; extra split is harmless elsewhere


def _round_up(x, m):
    return ((x + m - 1) // m) * m


def _vmem_plan():
    """Generation-aware scoped-VMEM limit and double-buffered working-set budget."""
    try:
        cap = int(pltpu.get_tpu_info().vmem_capacity_bytes)
    except Exception:
        cap = 64 * 1024 * 1024                         # conservative fallback (v7x)
    limit = min((cap * 3) // 4, 96 * 1024 * 1024)      # ~48 MiB on v7x, 96 MiB on v5e/v6e
    budget = max(limit - 8 * 1024 * 1024, limit // 2)  # headroom for compiler scratch
    return limit, budget


def _make_kernel(margin, use_matmul):
    def compute(o1_ref, o2_ref, lbl_ref, seg_ref, out_ref, acc_ref):
        i = pl.program_id(1)

        @pl.when(i == 0)
        def _():
            acc_ref[...] = jnp.zeros_like(acc_ref)

        o1 = o1_ref[...].astype(jnp.float32)      # [tbp, W]   (W = G*D)
        o2 = o2_ref[...].astype(jnp.float32)      # [tbp, W]
        lbl = lbl_ref[...].astype(jnp.float32)    # [tbp, G]

        diff = o1 - o2 + EPS                      # matches torch.pairwise_distance
        sq = diff * diff
        if use_matmul:
            # Segmented row-sum on the otherwise-idle MXU -> lane-dense [tbp, G].
            d2 = jnp.dot(sq, seg_ref[...], preferred_element_type=jnp.float32)
        else:
            d2 = jnp.sum(sq, axis=-1, keepdims=True)        # G == 1 fallback
        d = jnp.sqrt(d2)
        hinge = jnp.maximum(margin - d, 0.0)
        # d2 is used directly for the (1 - label) term (no sqrt->square round trip).
        acc_ref[...] += (1.0 - lbl) * d2 + lbl * (hinge * hinge)

        @pl.when(i == pl.num_programs(1) - 1)
        def _():
            out_ref[...] = jnp.sum(acc_ref[...]).reshape(1, 1, 1)

    if use_matmul:
        def kernel(o1_ref, o2_ref, lbl_ref, seg_ref, out_ref, acc_ref):
            compute(o1_ref, o2_ref, lbl_ref, seg_ref, out_ref, acc_ref)
    else:
        def kernel(o1_ref, o2_ref, lbl_ref, out_ref, acc_ref):
            compute(o1_ref, o2_ref, lbl_ref, None, out_ref, acc_ref)
    return kernel


def contrastive_loss(output1, output2, label, *, margin=MARGIN, tile_packed_rows=None):
    """output1, output2: [B, D]; label: [B] or [B, 1]. Returns scalar f32 loss."""
    B, D = output1.shape
    assert output2.shape == (B, D)
    label = jnp.asarray(label, jnp.float32).reshape(B, 1)

    in_isz = jnp.dtype(output1.dtype).itemsize

    # ---- packing factor G: logical rows per physical row (lane-dense column math) ----
    if D >= _TARGET_ROW_LANES:
        G = 1
    else:
        g0 = _LANE // math.gcd(D, _LANE)               # smallest G with G*D % 128 == 0
        G = g0 * max(1, _TARGET_ROW_LANES // (g0 * D))
        G = min(G, 256)
    W = G * D
    use_matmul = G > 1

    # ---- tile sizing: bytes-based target, capped by generation-aware VMEM budget -----
    vmem_limit, vmem_budget = _vmem_plan()
    Gl = _round_up(G, _LANE)                           # lane padding of label/acc blocks
    seg_bytes = 2 * W * Gl * 4 if use_matmul else 0    # resident segment matrix (f32)
    per_row = (4 * W * in_isz                          # o1 + o2, double-buffered
               + 2 * Gl * 4                            # packed label (f32), double-buffered
               + Gl * 4)                               # accumulator scratch
    tbp = _TARGET_TILE_BYTES // (W * in_isz)
    tbp = min(tbp, (vmem_budget - seg_bytes) // per_row)

    P = -(-B // G)                                     # packed rows needed
    tbp = min(tbp, _round_up(P, _SUB))
    tbp = max(_SUB, (tbp // _SUB) * _SUB)
    if tile_packed_rows is not None:                   # test hook: force small tiles
        tbp = max(_SUB, _round_up(int(tile_packed_rows), _SUB))

    n_tiles = -(-P // tbp)
    n_splits = _MAX_SPLITS if n_tiles >= _MAX_SPLITS else 1
    n_tiles = _round_up(n_tiles, n_splits)
    tps = n_tiles // n_splits                          # tiles per core-split
    P_pad = n_tiles * tbp
    B_pad = P_pad * G

    # ---- padding: o1 = 0, o2 = EPS, label = 0  =>  diff = 0, contribution exactly 0 ---
    pad = B_pad - B
    if pad:
        output1 = jnp.pad(output1, ((0, pad), (0, 0)))
        output2 = jnp.pad(output2, ((0, pad), (0, 0)), constant_values=EPS)
        label = jnp.pad(label, ((0, pad), (0, 0)))

    # Zero-copy, row-major packing reshapes.
    o1p = output1.reshape(P_pad, W)
    o2p = output2.reshape(P_pad, W)
    lblp = label.reshape(P_pad, G)

    kernel = _make_kernel(float(margin), use_matmul)

    in_specs = [
        pl.BlockSpec((tbp, W), lambda c, i: (c * tps + i, 0)),
        pl.BlockSpec((tbp, W), lambda c, i: (c * tps + i, 0)),
        pl.BlockSpec((tbp, G), lambda c, i: (c * tps + i, 0)),
    ]
    args = [o1p, o2p, lblp]
    if use_matmul:
        # Block-diagonal 0/1 segment matrix: column c belongs to logical row c // D.
        seg = (jnp.arange(W, dtype=jnp.int32)[:, None] // D
               == jnp.arange(G, dtype=jnp.int32)[None, :]).astype(jnp.float32)
        in_specs.append(pl.BlockSpec((W, G), lambda c, i: (0, 0)))   # resident, DMA'd once
        args.append(seg)

    grid_spec = pltpu.PrefetchScalarGridSpec(
        num_scalar_prefetch=0,
        grid=(n_splits, tps),
        in_specs=in_specs,
        out_specs=pl.BlockSpec((1, 1, 1), lambda c, i: (c, 0, 0)),
        scratch_shapes=[pltpu.VMEM((tbp, G), jnp.float32)],
    )

    cost = pl.CostEstimate(
        flops=int(6 * B_pad * D + 8 * B_pad),
        transcendentals=int(B_pad),
        bytes_accessed=int(2 * B_pad * D * in_isz + B_pad * 4 + n_splits * 4),
    )

    partials = pl.pallas_call(
        kernel,
        out_shape=jax.ShapeDtypeStruct((n_splits, 1, 1), jnp.float32),
        grid_spec=grid_spec,
        compiler_params=pltpu.CompilerParams(
            dimension_semantics=("parallel", "arbitrary"),
            vmem_limit_bytes=int(vmem_limit),
        ),
        cost_estimate=cost,
    )(*args)

    return jnp.sum(partials) * (1.0 / B)              # mean: constant 1/B, not a divide


def _reference_loss(output1, output2, label, margin=MARGIN):
    """Pure-JAX mirror of the PyTorch module for correctness checking."""
    label = jnp.asarray(label, jnp.float32).reshape(output1.shape[0], 1)
    o1 = output1.astype(jnp.float32)
    o2 = output2.astype(jnp.float32)
    d = jnp.sqrt(jnp.sum(jnp.square(o1 - o2 + EPS), axis=-1, keepdims=True))
    return jnp.mean((1.0 - label) * d ** 2
                    + label * jnp.maximum(margin - d, 0.0) ** 2)


if __name__ == "__main__":
    key = jax.random.PRNGKey(0)

    cases = [
        # Tiny shape consistent with the module; close pairs exercise the hinge branch.
        dict(B=8, D=32, close=True, tile=None),
        # Forced small tiles -> multi-tile grid, 2-way core split, cross-step accumulation,
        # and zero-contribution padding (B not a multiple of the packed tile).
        dict(B=1000, D=32, close=False, tile=8),
        # D that does not divide 128 -> exercises the general packing / segment matrix.
        dict(B=96, D=24, close=True, tile=None),
    ]

    for case in cases:
        B, D = case["B"], case["D"]
        k1, k2, k3 = jax.random.split(jax.random.fold_in(key, 31 * B + D), 3)
        o1 = jax.random.normal(k1, (B, D), dtype=jnp.float32)
        if case["close"]:
            o2 = o1 + 0.05 * jax.random.normal(k2, (B, D), dtype=jnp.float32)
        else:
            o2 = jax.random.normal(k2, (B, D), dtype=jnp.float32)
        lbl = jax.random.bernoulli(k3, 0.5, (B, 1)).astype(jnp.float32)

        loss = jax.block_until_ready(
            contrastive_loss(o1, o2, lbl, tile_packed_rows=case["tile"]))
        ref = _reference_loss(o1, o2, lbl)
        assert jnp.allclose(loss, ref, rtol=1e-4, atol=1e-5), (B, D, float(loss), float(ref))

    print("KERNEL_OK")
</pallas_src>

<mosaic_0001>
module attributes {stable_mosaic.version = 11 : i64} {
  func.func @kernel(%arg0: i32, %arg1: i32, %arg2: memref<8x1024xf32, #tpu.memory_space<vmem>>, %arg3: memref<8x1024xf32, #tpu.memory_space<vmem>>, %arg4: memref<8x32xf32, #tpu.memory_space<vmem>>, %arg5: memref<1024x32xf32, #tpu.memory_space<vmem>>, %arg6: memref<1x1x1xf32, #tpu.memory_space<vmem>>, %arg7: memref<8x32xf32, #tpu.memory_space<vmem>>) attributes {dimension_semantics = [#tpu.dimension_semantics<parallel>, #tpu.dimension_semantics<arbitrary>], iteration_bounds = array<i64: 1, 1>, scalar_prefetch = 0 : i64, scratch_operands = 1 : i64, tpu.core_type = #tpu.core_type<tc>, window_params = [{transform_indices = @transform_0, window_bounds = array<i64: 8, 1024>}, {transform_indices = @transform_1, window_bounds = array<i64: 8, 1024>}, {transform_indices = @transform_2, window_bounds = array<i64: 8, 32>}, {pipeline_mode = #tpu.pipeline_mode<synchronous>, transform_indices = @transform_3, window_bounds = array<i64: 1024, 32>}, {transform_indices = @transform_4, window_bounds = array<i64: 1, 1, 1>}]} {
    %c0_i32 = arith.constant 0 : i32
    %0 = arith.cmpi eq, %arg1, %c0_i32 : i32
    %1 = arith.extui %0 : i1 to i32
    %c0_i32_0 = arith.constant 0 : i32
    %2 = arith.cmpi ne, %1, %c0_i32_0 : i32
    scf.if %2 {
      %cst_18 = arith.constant 0.000000e+00 : f32
      %29 = vector.broadcast %cst_18 : f32 to vector<8x32xf32>
      %c0_19 = arith.constant 0 : index
      %c0_20 = arith.constant 0 : index
      %30 = vector.load %arg7[%c0_19, %c0_20] : memref<8x32xf32, #tpu.memory_space<vmem>>, vector<8x32xf32>
      tpu.vector_store %arg7[%c0_19, %c0_20], %29 {strides = array<i32>} : memref<8x32xf32, #tpu.memory_space<vmem>>, vector<8x32xf32>,
    } else {
    }
    %c0 = arith.constant 0 : index
    %c0_1 = arith.constant 0 : index
    %3 = vector.load %arg2[%c0, %c0_1] : memref<8x1024xf32, #tpu.memory_space<vmem>>, vector<8x1024xf32>
    %c0_2 = arith.constant 0 : index
    %c0_3 = arith.constant 0 : index
    %4 = vector.load %arg3[%c0_2, %c0_3] : memref<8x1024xf32, #tpu.memory_space<vmem>>, vector<8x1024xf32>
    %c0_4 = arith.constant 0 : index
    %c0_5 = arith.constant 0 : index
    %5 = vector.load %arg4[%c0_4, %c0_5] : memref<8x32xf32, #tpu.memory_space<vmem>>, vector<8x32xf32>
    %6 = arith.subf %3, %4 : vector<8x1024xf32>
    %cst = arith.constant 9.99999997E-7 : f32
    %7 = vector.broadcast %cst : f32 to vector<8x1024xf32>
    %8 = arith.addf %6, %7 : vector<8x1024xf32>
    %9 = arith.mulf %8, %8 : vector<8x1024xf32>
    %c0_6 = arith.constant 0 : index
    %c0_7 = arith.constant 0 : index
    %10 = vector.load %arg5[%c0_6, %c0_7] : memref<1024x32xf32, #tpu.memory_space<vmem>>, vector<1024x32xf32>
    %cst_8 = arith.constant dense<0.000000e+00> : vector<8x32xf32>
    %11 = tpu.matmul %9, %10, %cst_8 {dimension_numbers = #tpu.dot_dimension_numbers<[1], [0], [0], [1], [0, 0, 1, 1], [], []>} : vector<8x1024xf32>, vector<1024x32xf32>, vector<8x32xf32> -> vector<8x32xf32>
    %12 = math.sqrt %11 : vector<8x32xf32>
    %cst_9 = arith.constant 2.000000e+00 : f32
    %13 = vector.broadcast %cst_9 : f32 to vector<8x32xf32>
    %14 = arith.subf %13, %12 : vector<8x32xf32>
    %cst_10 = arith.constant 0.000000e+00 : f32
    %15 = vector.broadcast %cst_10 : f32 to vector<8x32xf32>
    %16 = arith.maximumf %14, %15 : vector<8x32xf32>
    %c0_11 = arith.constant 0 : index
    %c0_12 = arith.constant 0 : index
    %17 = vector.load %arg7[%c0_11, %c0_12] : memref<8x32xf32, #tpu.memory_space<vmem>>, vector<8x32xf32>
    %cst_13 = arith.constant 1.000000e+00 : f32
    %18 = vector.broadcast %cst_13 : f32 to vector<8x32xf32>
    %19 = arith.subf %18, %5 : vector<8x32xf32>
    %20 = arith.mulf %19, %11 : vector<8x32xf32>
    %21 = arith.mulf %16, %16 : vector<8x32xf32>
    %22 = arith.mulf %5, %21 : vector<8x32xf32>
    %23 = arith.addf %20, %22 : vector<8x32xf32>
    %24 = arith.addf %17, %23 : vector<8x32xf32>
    %c0_14 = arith.constant 0 : index
    %c0_15 = arith.constant 0 : index
    %25 = vector.load %arg7[%c0_14, %c0_15] : memref<8x32xf32, #tpu.memory_space<vmem>>, vector<8x32xf32>
    tpu.vector_store %arg7[%c0_14, %c0_15], %24 {strides = array<i32>} : memref<8x32xf32, #tpu.memory_space<vmem>>, vector<8x32xf32>,
    %c0_i32_16 = arith.constant 0 : i32
    %26 = arith.cmpi eq, %arg1, %c0_i32_16 : i32
    %27 = arith.extui %26 : i1 to i32
    %c0_i32_17 = arith.constant 0 : i32
    %28 = arith.cmpi ne, %27, %c0_i32_17 : i32
    scf.if %28 {
      %c0_18 = arith.constant 0 : index
      %c0_19 = arith.constant 0 : index
      %29 = vector.load %arg7[%c0_18, %c0_19] : memref<8x32xf32, #tpu.memory_space<vmem>>, vector<8x32xf32>
      %30 = vector.shape_cast %29 : vector<8x32xf32> to vector<1x8x32xf32>
      %cst_20 = arith.constant dense<0.000000e+00> : vector<1xf32>
      %31 = vector.multi_reduction <add>, %30, %cst_20 [1, 2] : vector<1x8x32xf32> to vector<1xf32>
      %32 = vector.shape_cast %31 : vector<1xf32> to vector<1x1x1xf32>
      %33 = vector.extract %32[0, 0, 0] : f32 from vector<1x1x1xf32>
      %34 = vector.broadcast %33 : f32 to vector<1x1x1xf32>
      %c0_21 = arith.constant 0 : index
      %c0_22 = arith.constant 0 : index
      %c0_23 = arith.constant 0 : index
      %35 = vector.load %arg6[%c0_21, %c0_22, %c0_23] : memref<1x1x1xf32, #tpu.memory_space<vmem>>, vector<1x1x1xf32>
      tpu.vector_store %arg6[%c0_21, %c0_22, %c0_23], %34 {strides = array<i32>} : memref<1x1x1xf32, #tpu.memory_space<vmem>>, vector<1x1x1xf32>,
    } else {
    }
    return
  }
  func.func @transform_0(%arg0: i32, %arg1: i32) -> (i32, i32) {
    %c1_i32 = arith.constant 1 : i32
    %0 = arith.muli %arg0, %c1_i32 : i32
    %1 = arith.addi %0, %arg1 : i32
    %c0_i32 = arith.constant 0 : i32
    %c0_i32_0 = arith.constant 0 : i32
    return %1, %c0_i32 : i32, i32
  }
  func.func @transform_1(%arg0: i32, %arg1: i32) -> (i32, i32) {
    %c1_i32 = arith.constant 1 : i32
    %0 = arith.muli %arg0, %c1_i32 : i32
    %1 = arith.addi %0, %arg1 : i32
    %c0_i32 = arith.constant 0 : i32
    %c0_i32_0 = arith.constant 0 : i32
    return %1, %c0_i32 : i32, i32
  }
  func.func @transform_2(%arg0: i32, %arg1: i32) -> (i32, i32) {
    %c1_i32 = arith.constant 1 : i32
    %0 = arith.muli %arg0, %c1_i32 : i32
    %1 = arith.addi %0, %arg1 : i32
    %c0_i32 = arith.constant 0 : i32
    %c0_i32_0 = arith.constant 0 : i32
    return %1, %c0_i32 : i32, i32
  }
  func.func @transform_3(%arg0: i32, %arg1: i32) -> (i32, i32) {
    %c0_i32 = arith.constant 0 : i32
    %c0_i32_0 = arith.constant 0 : i32
    %c0_i32_1 = arith.constant 0 : i32
    return %c0_i32, %c0_i32_0 : i32, i32
  }
  func.func @transform_4(%arg0: i32, %arg1: i32) -> (i32, i32, i32) {
    %c0_i32 = arith.constant 0 : i32
    %c0_i32_0 = arith.constant 0 : i32
    %c0_i32_1 = arith.constant 0 : i32
    return %arg0, %c0_i32, %c0_i32_0 : i32, i32, i32
  }
}

</mosaic_0001>

<bundles_post_ra>
// kernel: tpu_custom_call.1
= control target key start
LH: loop header
LB: loop body
LE: loop exit
PB: predicated region body
PF: predicated region fallthrough
CT: control target
= control target key end

     0   :  { %s1372_s0 = inlined_call_operand.vmem [shape: f32[8,1024], index: 0, kind: input, shape index: {}]   ;;  %s1373_s1 = inlined_call_operand.vmem [shape: f32[8,1024], index: 1, kind: input, shape index: {}]   ;;  %s1374_s2 = inlined_call_operand.vmem [shape: f32[8,32], index: 2, kind: input, shape index: {}]   ;;  %s1375_s3 = inlined_call_operand.vmem [shape: f32[1024,32], index: 3, kind: input, shape index: {}]   ;;  %s1376_s4 = inlined_call_operand.hbm [shape: f32[1,1,1], index: 4, kind: output, shape index: {}]  }
   0x1   :  { %v138_v0 = vld [vmem:[%s1375_s3 + $0x80] sm:$0xff]  ;;  %v139_v1 = vld [vmem:[%s1375_s3 + $0x88] sm:$0xff]  ;;  %v140_v11 = vld [vmem:[%s1375_s3 + $0x90] sm:$0xff] }
   0x2   :  { %v170_v2 = vld [vmem:[%s1375_s3 + $0x180] sm:$0xff]  ;;  %v737_v3 = vpack.c.bf16 %v139_v1, %v138_v0  ;;  %v171_v4 = vld [vmem:[%s1375_s3 + $0x188] sm:$0xff]  ;;  %v141_v13 = vld [vmem:[%s1375_s3 + $0x98] sm:$0xff] }
   0x3   :  { %v122_v5 = vld [vmem:[%s1375_s3] sm:$0xff]  ;;  %v123_v6 = vld [vmem:[%s1375_s3 + $0x8] sm:$0xff]  ;;  %v769_v7 = vpack.c.bf16 %v171_v4, %v170_v2  ;;  %v172_v14 = vld [vmem:[%s1375_s3 + $0x190] sm:$0xff]  ;;  %v741_v16 = vpack.c.bf16 %v141_v13, %v140_v11 }
   0x4   :  { %v739_v8 = vpack.c.bf16 %v123_v6, %v122_v5  ;;  %v154_v9 = vld [vmem:[%s1375_s3 + $0x100] sm:$0xff]  ;;  %v155_v10 = vld [vmem:[%s1375_s3 + $0x108] sm:$0xff]  ;;  %738 = vmatprep.subr.bf16.mxu0 %v737_v3  ;;  %v173_v15 = vld [vmem:[%s1375_s3 + $0x198] sm:$0xff] }
   0x5   :  { %v771_v12 = vpack.c.bf16 %v155_v10, %v154_v9  ;;  %770 = vmatprep.subr.bf16.mxu1 %v769_v7  ;;  %v773_v17 = vpack.c.bf16 %v173_v15, %v172_v14  ;;  %v124_v18 = vld [vmem:[%s1375_s3 + $0x10] sm:$0xff]  ;;  %v125_v19 = vld [vmem:[%s1375_s3 + $0x18] sm:$0xff]  ;;  %v142_v23 = vld [vmem:[%s1375_s3 + $0xa0] sm:$0xff] }
   0x6   :  { %740 = vmatpush3.bf16.msra.mxu0 %v739_v8  ;;  %v156_v20 = vld [vmem:[%s1375_s3 + $0x110] sm:$0xff]  ;;  %v743_v21 = vpack.c.bf16 %v125_v19, %v124_v18  ;;  %v157_v22 = vld [vmem:[%s1375_s3 + $0x118] sm:$0xff]  ;;  %v143_v24 = vld [vmem:[%s1375_s3 + $0xa8] sm:$0xff] }
   0x7   :  { %772 = vmatpush3.bf16.msra.mxu1 %v771_v12  ;;  %742 = vmatprep.subr.bf16.mxu0 %v741_v16  ;;  %v775_v25 = vpack.c.bf16 %v157_v22, %v156_v20  ;;  %v745_v26 = vpack.c.bf16 %v143_v24, %v142_v23  ;;  %v174_v27 = vld [vmem:[%s1375_s3 + $0x1a0] sm:$0xff]  ;;  %v175_v28 = vld [vmem:[%s1375_s3 + $0x1a8] sm:$0xff]  ;;  %v144_v35 = vld [vmem:[%s1375_s3 + $0xb0] sm:$0xff] }
   0x8   :  { %774 = vmatprep.subr.bf16.mxu1 %v773_v17  ;;  %v126_v29 = vld [vmem:[%s1375_s3 + $0x20] sm:$0xff]  ;;  %v777_v30 = vpack.c.bf16 %v175_v28, %v174_v27  ;;  %v127_v31 = vld [vmem:[%s1375_s3 + $0x28] sm:$0xff]  ;;  %v145_v36 = vld [vmem:[%s1375_s3 + $0xb8] sm:$0xff] }
   0x9   :  { %v158_v32 = vld [vmem:[%s1375_s3 + $0x120] sm:$0xff]  ;;  %v159_v33 = vld [vmem:[%s1375_s3 + $0x128] sm:$0xff]  ;;  %v747_v34 = vpack.c.bf16 %v127_v31, %v126_v29  ;;  %v176_v37 = vld [vmem:[%s1375_s3 + $0x1b0] sm:$0xff]  ;;  %v749_v39 = vpack.c.bf16 %v145_v36, %v144_v35 }
   0xa   :  { %744 = vmatpush3.bf16.msra.mxu0 %v743_v21  ;;  %v779_v38 = vpack.c.bf16 %v159_v33, %v158_v32  ;;  %v177_v40 = vld [vmem:[%s1375_s3 + $0x1b8] sm:$0xff]  ;;  %v128_v41 = vld [vmem:[%s1375_s3 + $0x30] sm:$0xff]  ;;  %v146_v46 = vld [vmem:[%s1375_s3 + $0xc0] sm:$0xff] }
   0xb   :  { %776 = vmatpush3.bf16.msra.mxu1 %v775_v25  ;;  %746 = vmatprep.subr.bf16.mxu0 %v745_v26  ;;  %v129_v42 = vld [vmem:[%s1375_s3 + $0x38] sm:$0xff]  ;;  %v781_v43 = vpack.c.bf16 %v177_v40, %v176_v37  ;;  %v160_v44 = vld [vmem:[%s1375_s3 + $0x130] sm:$0xff]  ;;  %v147_v47 = vld [vmem:[%s1375_s3 + $0xc8] sm:$0xff] }
   0xc   :  { %778 = vmatprep.subr.bf16.mxu1 %v777_v30  ;;  %v161_v45 = vld [vmem:[%s1375_s3 + $0x138] sm:$0xff]  ;;  %v178_v48 = vld [vmem:[%s1375_s3 + $0x1c0] sm:$0xff]  ;;  %v179_v49 = vld [vmem:[%s1375_s3 + $0x1c8] sm:$0xff]  ;;  %v751_v50 = vpack.c.bf16 %v129_v42, %v128_v41  ;;  %v753_v52 = vpack.c.bf16 %v147_v47, %v146_v46 }
   0xd   :  { %v783_v51 = vpack.c.bf16 %v161_v45, %v160_v44  ;;  %v130_v53 = vld [vmem:[%s1375_s3 + $0x40] sm:$0xff]  ;;  %v131_v54 = vld [vmem:[%s1375_s3 + $0x48] sm:$0xff]  ;;  %v785_v56 = vpack.c.bf16 %v179_v49, %v178_v48  ;;  %v148_v58 = vld [vmem:[%s1375_s3 + $0xd0] sm:$0xff] }
   0xe   :  { %748 = vmatpush3.bf16.msra.mxu0 %v747_v34  ;;  %v162_v55 = vld [vmem:[%s1375_s3 + $0x140] sm:$0xff]  ;;  %v163_v57 = vld [vmem:[%s1375_s3 + $0x148] sm:$0xff]  ;;  %v149_v59 = vld [vmem:[%s1375_s3 + $0xd8] sm:$0xff]  ;;  %v755_v62 = vpack.c.bf16 %v131_v54, %v130_v53 }
   0xf   :  { %780 = vmatpush3.bf16.msra.mxu1 %v779_v38  ;;  %750 = vmatprep.subr.bf16.mxu0 %v749_v39  ;;  %v180_v60 = vld [vmem:[%s1375_s3 + $0x1d0] sm:$0xff]  ;;  %v181_v61 = vld [vmem:[%s1375_s3 + $0x1d8] sm:$0xff]  ;;  %v787_v0 = vpack.c.bf16 %v163_v57, %v162_v55  ;;  %v757_v1 = vpack.c.bf16 %v149_v59, %v148_v58  ;;  %v150_v6 = vld [vmem:[%s1375_s3 + $0xe0] sm:$0xff] }
  0x10   :  { %782 = vmatprep.subr.bf16.mxu1 %v781_v43  ;;  %v132_v63 = vld [vmem:[%s1375_s3 + $0x50] sm:$0xff]  ;;  %v133_v2 = vld [vmem:[%s1375_s3 + $0x58] sm:$0xff]  ;;  %v789_v5 = vpack.c.bf16 %v181_v61, %v180_v60  ;;  %v151_v7 = vld [vmem:[%s1375_s3 + $0xe8] sm:$0xff] }
  0x11   :  { %v164_v3 = vld [vmem:[%s1375_s3 + $0x150] sm:$0xff]  ;;  %v165_v4 = vld [vmem:[%s1375_s3 + $0x158] sm:$0xff]  ;;  %v182_v8 = vld [vmem:[%s1375_s3 + $0x1e0] sm:$0xff]  ;;  %v759_v12 = vpack.c.bf16 %v133_v2, %v132_v63  ;;  %v761_v18 = vpack.c.bf16 %v151_v7, %v150_v6 }
  0x12   :  { %752 = vmatpush3.bf16.msra.mxu0 %v751_v50  ;;  %v183_v9 = vld [vmem:[%s1375_s3 + $0x1e8] sm:$0xff]  ;;  %v134_v10 = vld [vmem:[%s1375_s3 + $0x60] sm:$0xff]  ;;  %v152_v15 = vld [vmem:[%s1375_s3 + $0xf0] sm:$0xff]  ;;  %v791_v17 = vpack.c.bf16 %v165_v4, %v164_v3 }
  0x13   :  { %784 = vmatpush3.bf16.msra.mxu1 %v783_v51  ;;  %754 = vmatprep.subr.bf16.mxu0 %v753_v52  ;;  %v135_v11 = vld [vmem:[%s1375_s3 + $0x68] sm:$0xff]  ;;  %v166_v13 = vld [vmem:[%s1375_s3 + $0x160] sm:$0xff]  ;;  %v153_v16 = vld [vmem:[%s1375_s3 + $0xf8] sm:$0xff]  ;;  %v793_v23 = vpack.c.bf16 %v183_v9, %v182_v8 }
  0x14   :  { %786 = vmatprep.subr.bf16.mxu1 %v785_v56  ;;  %v167_v14 = vld [vmem:[%s1375_s3 + $0x168] sm:$0xff]  ;;  %v184_v19 = vld [vmem:[%s1375_s3 + $0x1f0] sm:$0xff]  ;;  %v185_v20 = vld [vmem:[%s1375_s3 + $0x1f8] sm:$0xff]  ;;  %v763_v32 = vpack.c.bf16 %v135_v11, %v134_v10  ;;  %v765_v37 = vpack.c.bf16 %v153_v16, %v152_v15 }
  0x15   :  { %v82_v21 = vld [vmem:[%s1372_s0 + $0x8] sm:$0xff]  ;;  %v84_v25 = vld [vmem:[%s1372_s0 + $0x18] sm:$0xff]  ;;  %v81_v27 = vld [vmem:[%s1372_s0] sm:$0xff]  ;;  %v795_v36 = vpack.c.bf16 %v167_v14, %v166_v13  ;;  %v797_v42 = vpack.c.bf16 %v185_v20, %v184_v19 }
  0x16   :  { %756 = vmatpush3.bf16.msra.mxu0 %v755_v62  ;;  %v90_v22 = vld [vmem:[%s1373_s1 + $0x8] sm:$0xff]  ;;  %v92_v26 = vld [vmem:[%s1373_s1 + $0x18] sm:$0xff]  ;;  %v89_v29 = vld [vmem:[%s1373_s1] sm:$0xff] }
  0x17   :  { %788 = vmatpush3.bf16.msra.mxu1 %v787_v0  ;;  %758 = vmatprep.subr.bf16.mxu0 %v757_v1  ;;  %v99_v24 = vsub.f32 %v82_v21, %v90_v22  ;;  %v101_v28 = vsub.f32 %v84_v25, %v92_v26  ;;  %v83_v30 = vld [vmem:[%s1372_s0 + $0x10] sm:$0xff]  ;;  %v98_v34 = vsub.f32 %v81_v27, %v89_v29  ;;  %v137_v39 = vld [vmem:[%s1375_s3 + $0x78] sm:$0xff]  ;;  %v202_v45 = vld [vmem:[%s1375_s3 + $0x280] sm:$0xff] }
  0x18   :  { %790 = vmatprep.subr.bf16.mxu1 %v789_v5  ;;  %v91_v31 = vld [vmem:[%s1373_s1 + $0x10] sm:$0xff]  ;;  %v169_v43 = vld [vmem:[%s1375_s3 + $0x178] sm:$0xff]  ;;  %v203_v46 = vld [vmem:[%s1375_s3 + $0x288] sm:$0xff] }
  0x19   :  { %v107_v33 = vadd.f32 1e-06, %v99_v24  ;;  %v100_v35 = vsub.f32 %v83_v30, %v91_v31  ;;  %v136_v38 = vld [vmem:[%s1375_s3 + $0x70] sm:$0xff]  ;;  %v109_v41 = vadd.f32 1e-06, %v101_v28  ;;  %v234_v49 = vld [vmem:[%s1375_s3 + $0x380] sm:$0xff]  ;;  %v801_v54 = vpack.c.bf16 %v203_v46, %v202_v45 }
  0x1a   :  { %760 = vmatpush3.bf16.msra.mxu0 %v759_v12  ;;  %v168_v40 = vld [vmem:[%s1375_s3 + $0x170] sm:$0xff]  ;;  %v106_v48 = vadd.f32 1e-06, %v98_v34  ;;  %v235_v50 = vld [vmem:[%s1375_s3 + $0x388] sm:$0xff]  ;;  %v767_v51 = vpack.c.bf16 %v137_v39, %v136_v38  ;;  %v186_v55 = vld [vmem:[%s1375_s3 + $0x200] sm:$0xff] }
  0x1b   :  { %792 = vmatpush3.bf16.msra.mxu1 %v791_v17  ;;  %762 = vmatprep.subr.bf16.mxu0 %v761_v18  ;;  %v115_v44 = vmul.f32 %v107_v33, %v107_v33  ;;  %v117_v47 = vmul.f32 %v109_v41, %v109_v41  ;;  %v108_v52 = vadd.f32 1e-06, %v100_v35  ;;  %v799_v53 = vpack.c.bf16 %v169_v43, %v168_v40  ;;  %v187_v56 = vld [vmem:[%s1375_s3 + $0x208] sm:$0xff]  ;;  %v218_v57 = vld [vmem:[%s1375_s3 + $0x300] sm:$0xff]  ;;  %v204_v60 = vld [vmem:[%s1375_s3 + $0x290] sm:$0xff] }
  0x1c   :  { %794 = vmatprep.subr.bf16.mxu1 %v793_v23  ;;  %v833_v58 = vpack.c.bf16 %v235_v50, %v234_v49  ;;  %v219_v59 = vld [vmem:[%s1375_s3 + $0x308] sm:$0xff]  ;;  %v205_v61 = vld [vmem:[%s1375_s3 + $0x298] sm:$0xff]  ;;  %v114_v62 = vmul.f32 %v106_v48, %v106_v48  ;;  %v236_v63 = vld [vmem:[%s1375_s3 + $0x390] sm:$0xff]  ;;  %v803_v2 = vpack.c.bf16 %v187_v56, %v186_v55 }
  0x1d   :  { %314 = vmatprep.mubr.f32.mxu0 %v115_v44  ;;  %384 = vmatprep.mubr.f32.mxu1 %v117_v47  ;;  %v237_v0 = vld [vmem:[%s1375_s3 + $0x398] sm:$0xff]  ;;  %v116_v1 = vmul.f32 %v108_v52, %v108_v52  ;;  %v835_v3 = vpack.c.bf16 %v219_v59, %v218_v57  ;;  %v805_v4 = vpack.c.bf16 %v205_v61, %v204_v60  ;;  %v188_v5 = vld [vmem:[%s1375_s3 + $0x210] sm:$0xff]  ;;  %v206_v10 = vld [vmem:[%s1375_s3 + $0x2a0] sm:$0xff] }
  0x1e   :  { %764 = vmatpush3.bf16.msra.mxu0 %v763_v32  ;;  %v189_v6 = vld [vmem:[%s1375_s3 + $0x218] sm:$0xff]  ;;  %v220_v7 = vld [vmem:[%s1375_s3 + $0x310] sm:$0xff]  ;;  %v837_v8 = vpack.c.bf16 %v237_v0, %v236_v63  ;;  %v207_v11 = vld [vmem:[%s1375_s3 + $0x2a8] sm:$0xff] }
  0x1f   :  { %796 = vmatpush3.bf16.msra.mxu1 %v795_v36  ;;  %766 = vmatprep.subr.bf16.mxu0 %v765_v37  ;;  %v221_v9 = vld [vmem:[%s1375_s3 + $0x318] sm:$0xff]  ;;  %v238_v12 = vld [vmem:[%s1375_s3 + $0x3a0] sm:$0xff]  ;;  %v239_v13 = vld [vmem:[%s1375_s3 + $0x3a8] sm:$0xff]  ;;  %v807_v14 = vpack.c.bf16 %v189_v6, %v188_v5  ;;  %v809_v16 = vpack.c.bf16 %v207_v11, %v206_v10 }
  0x20   :  { %798 = vmatprep.subr.bf16.mxu1 %v797_v42  ;;  %v839_v15 = vpack.c.bf16 %v221_v9, %v220_v7  ;;  %v190_v17 = vld [vmem:[%s1375_s3 + $0x220] sm:$0xff]  ;;  %v191_v18 = vld [vmem:[%s1375_s3 + $0x228] sm:$0xff]  ;;  %v841_v20 = vpack.c.bf16 %v239_v13, %v238_v12  ;;  %v208_v22 = vld [vmem:[%s1375_s3 + $0x2b0] sm:$0xff] }
  0x21   :  { %v222_v19 = vld [vmem:[%s1375_s3 + $0x320] sm:$0xff]  ;;  %v223_v21 = vld [vmem:[%s1375_s3 + $0x328] sm:$0xff]  ;;  %v209_v23 = vld [vmem:[%s1375_s3 + $0x2b8] sm:$0xff]  ;;  %v811_v26 = vpack.c.bf16 %v191_v18, %v190_v17 }
  0x22   :  { %768 = vmatpush3.bf16.msra.mxu0 %v767_v51  ;;  %v240_v24 = vld [vmem:[%s1375_s3 + $0x3b0] sm:$0xff]  ;;  %v241_v25 = vld [vmem:[%s1375_s3 + $0x3b8] sm:$0xff]  ;;  %v843_v27 = vpack.c.bf16 %v223_v21, %v222_v19  ;;  %v813_v28 = vpack.c.bf16 %v209_v23, %v208_v22  ;;  %v210_v34 = vld [vmem:[%s1375_s3 + $0x2c0] sm:$0xff] }
  0x23   :  { %800 = vmatpush3.bf16.msra.mxu1 %v799_v53  ;;  %802 = vmatprep.subr.bf16.mxu0 %v801_v54  ;;  %v192_v29 = vld [vmem:[%s1375_s3 + $0x230] sm:$0xff]  ;;  %v193_v30 = vld [vmem:[%s1375_s3 + $0x238] sm:$0xff]  ;;  %v845_v32 = vpack.c.bf16 %v241_v25, %v240_v24  ;;  %v211_v35 = vld [vmem:[%s1375_s3 + $0x2c8] sm:$0xff] }
  0x24   :  { %834 = vmatprep.subr.bf16.mxu1 %v833_v58  ;;  %v224_v31 = vld [vmem:[%s1375_s3 + $0x330] sm:$0xff]  ;;  %v225_v33 = vld [vmem:[%s1375_s3 + $0x338] sm:$0xff]  ;;  %v242_v36 = vld [vmem:[%s1375_s3 + $0x3c0] sm:$0xff]  ;;  %v815_v38 = vpack.c.bf16 %v193_v30, %v192_v29  ;;  %v817_v43 = vpack.c.bf16 %v211_v35, %v210_v34 }
  0x25   :  { %315 = vmatmul.mubr.f32.vlgmr.msra.gmra.mrb[0].mxu0 %v114_v62  ;;  %v243_v37 = vld [vmem:[%s1375_s3 + $0x3c8] sm:$0xff]  ;;  %v194_v39 = vld [vmem:[%s1375_s3 + $0x240] sm:$0xff]  ;;  %v847_v42 = vpack.c.bf16 %v225_v33, %v224_v31  ;;  %v212_v45 = vld [vmem:[%s1375_s3 + $0x2d0] sm:$0xff] }
  0x26   :  { %385 = vmatmul.mubr.f32.vlgmr.msra.gmra.mrb[0].mxu1 %v116_v1  ;;  %804 = vmatpush3.bf16.msra.mxu0 %v803_v2  ;;  %v195_v40 = vld [vmem:[%s1375_s3 + $0x248] sm:$0xff]  ;;  %v226_v41 = vld [vmem:[%s1375_s3 + $0x340] sm:$0xff]  ;;  %v849_v47 = vpack.c.bf16 %v243_v37, %v242_v36  ;;  %v213_v48 = vld [vmem:[%s1375_s3 + $0x2d8] sm:$0xff] }
  0x27   :  { %836 = vmatpush3.bf16.msra.mxu1 %v835_v3  ;;  %806 = vmatprep.subr.bf16.mxu0 %v805_v4  ;;  %v227_v44 = vld [vmem:[%s1375_s3 + $0x348] sm:$0xff]  ;;  %v244_v49 = vld [vmem:[%s1375_s3 + $0x3d0] sm:$0xff]  ;;  %v245_v51 = vld [vmem:[%s1375_s3 + $0x3d8] sm:$0xff]  ;;  %v819_v55 = vpack.c.bf16 %v195_v40, %v194_v39 }
  0x28   :  { %838 = vmatprep.subr.bf16.mxu1 %v837_v8  ;;  %v86_v46 = vld [vmem:[%s1372_s0 + $0x28] sm:$0xff]  ;;  %v88_v53 = vld [vmem:[%s1372_s0 + $0x38] sm:$0xff] }
  0x29   :  { %v94_v50 = vld [vmem:[%s1373_s1 + $0x28] sm:$0xff]  ;;  %v96_v54 = vld [vmem:[%s1373_s1 + $0x38] sm:$0xff] }
  0x2a   :  { %808 = vmatpush3.bf16.msra.mxu0 %v807_v14  ;;  %v103_v52 = vsub.f32 %v86_v46, %v94_v50  ;;  %v105_v56 = vsub.f32 %v88_v53, %v96_v54 }
  0x2b   :  { %840 = vmatpush3.bf16.msra.mxu1 %v839_v15  ;;  %810 = vmatprep.subr.bf16.mxu0 %v809_v16 }
  0x2c   :  { %842 = vmatprep.subr.bf16.mxu1 %v841_v20 }
  0x2e   :  { %812 = vmatpush3.bf16.msra.mxu0 %v811_v26 }
  0x2f   :  { %844 = vmatpush3.bf16.msra.mxu1 %v843_v27  ;;  %814 = vmatprep.subr.bf16.mxu0 %v813_v28 }
  0x30   :  { %846 = vmatprep.subr.bf16.mxu1 %v845_v32 }
  0x32   :  { %816 = vmatpush3.bf16.msra.mxu0 %v815_v38 }
  0x33   :  { %9 = vsyncpa [#allocation4], 0  ;;  %848 = vmatpush3.bf16.msra.mxu1 %v847_v42  ;;  %818 = vmatprep.subr.bf16.mxu0 %v817_v43  ;;  %v851_v57 = vpack.c.bf16 %v227_v44, %v226_v41  ;;  %v821_v58 = vpack.c.bf16 %v213_v48, %v212_v45  ;;  %v196_v59 = vld [vmem:[%s1375_s3 + $0x250] sm:$0xff]  ;;  %v197_v60 = vld [vmem:[%s1375_s3 + $0x258] sm:$0xff]  ;;  %v111_v62 = vadd.f32 1e-06, %v103_v52  ;;  %v853_v63 = vpack.c.bf16 %v245_v51, %v244_v49 }
  0x34   :  { %v228_v61 = vld [vmem:[%s1375_s3 + $0x350] sm:$0xff]  ;;  %850 = vmatprep.subr.bf16.mxu1 %v849_v47  ;;  %v229_v0 = vld [vmem:[%s1375_s3 + $0x358] sm:$0xff]  ;;  %v214_v1 = vld [vmem:[%s1375_s3 + $0x2e0] sm:$0xff]  ;;  %v113_v3 = vadd.f32 1e-06, %v105_v56  ;;  %v823_v8 = vpack.c.bf16 %v197_v60, %v196_v59  ;;  %vm79_vm0 = vcmask 261120  }
  0x35   :  { %v215_v2 = vld [vmem:[%s1375_s3 + $0x2e8] sm:$0xff]  ;;  %v198_v4 = vld [vmem:[%s1375_s3 + $0x260] sm:$0xff]  ;;  %v119_v7 = vmul.f32 %v111_v62, %v111_v62  ;;  %v855_v13 = vpack.c.bf16 %v229_v0, %v228_v61  ;;  %v87_v16 = vld [vmem:[%s1372_s0 + $0x30] sm:$0xff]  ;;  %v895_v40 = vmov 0.0   ;;  %vm563_vm3 = vcmask 0  }
  0x36   :  { %v246_v5 = vld [vmem:[%s1375_s3 + $0x3e0] sm:$0xff]  ;;  %v247_v6 = vld [vmem:[%s1375_s3 + $0x3e8] sm:$0xff]  ;;  %820 = vmatpush3.bf16.msra.mxu0 %v819_v55  ;;  %v121_v12 = vmul.f32 %v113_v3, %v113_v3  ;;  %v825_v14 = vpack.c.bf16 %v215_v2, %v214_v1  ;;  %v95_v17 = vld [vmem:[%s1373_s1 + $0x30] sm:$0xff]  ;;  %80 = vst.msk [vmem:[#allocation2] sm:$0xff] %vm79_vm0, %v895_v40 }
  0x37   :  { %v199_v9 = vld [vmem:[%s1375_s3 + $0x268] sm:$0xff]  ;;  %v85_v10 = vld [vmem:[%s1372_s0 + $0x20] sm:$0xff]  ;;  %852 = vmatpush3.bf16.msra.mxu1 %v851_v57  ;;  %822 = vmatprep.subr.bf16.mxu0 %v821_v58  ;;  %v857_v18 = vpack.c.bf16 %v247_v6, %v246_v5  ;;  %v216_v20 = vld [vmem:[%s1375_s3 + $0x2f0] sm:$0xff]  ;;  %v104_v26 = vsub.f32 %v87_v16, %v95_v17 }
  0x38   :  { %v93_v11 = vld [vmem:[%s1373_s1 + $0x20] sm:$0xff]  ;;  %854 = vmatprep.subr.bf16.mxu1 %v853_v63  ;;  %v231_v19 = vld [vmem:[%s1375_s3 + $0x368] sm:$0xff]  ;;  %v217_v21 = vld [vmem:[%s1375_s3 + $0x2f8] sm:$0xff]  ;;  %454 = vmatprep.mubr.f32.mxu0 %v119_v7  ;;  %v827_v25 = vpack.c.bf16 %v199_v9, %v198_v4 }
  0x39   :  { %v230_v15 = vld [vmem:[%s1375_s3 + $0x360] sm:$0xff]  ;;  %v248_v22 = vld [vmem:[%s1375_s3 + $0x3f0] sm:$0xff]  ;;  %v249_v23 = vld [vmem:[%s1375_s3 + $0x3f8] sm:$0xff]  ;;  %v102_v24 = vsub.f32 %v85_v10, %v93_v11  ;;  %524 = vmatprep.mubr.f32.mxu1 %v121_v12  ;;  %v829_v28 = vpack.c.bf16 %v217_v21, %v216_v20  ;;  %v112_v36 = vadd.f32 1e-06, %v104_v26 }
  0x3a   :  { %824 = vmatpush3.bf16.msra.mxu0 %v823_v8  ;;  %v859_v27 = vpack.c.bf16 %v231_v19, %v230_v15  ;;  %v200_v29 = vld [vmem:[%s1375_s3 + $0x270] sm:$0xff]  ;;  %v201_v30 = vld [vmem:[%s1375_s3 + $0x278] sm:$0xff]  ;;  %v861_v31 = vpack.c.bf16 %v249_v23, %v248_v22  ;;  %v97_v60 = vld [vmem:[%s1374_s2] sm:$0xff]  ;;  %s896_s2 = smov [#allocation3]  }
  0x3b   :  { %856 = vmatpush3.bf16.msra.mxu1 %v855_v13  ;;  %826 = vmatprep.subr.bf16.mxu0 %v825_v14  ;;  %v232_v32 = vld [vmem:[%s1375_s3 + $0x370] sm:$0xff]  ;;  %v233_v33 = vld [vmem:[%s1375_s3 + $0x378] sm:$0xff]  ;;  %v110_v34 = vadd.f32 1e-06, %v102_v24  ;;  %v831_v35 = vpack.c.bf16 %v201_v30, %v200_v29  ;;  %v120_v39 = vmul.f32 %v112_v36, %v112_v36  ;;  %v540_v0 = vsub.f32 1.0, %v97_v60  ;;  %s571_s16 = sshll.u32 %s896_s2, 4  ;;  %s572_s16 = int_to_ptr.vmem [resolvable:$true] %s571_s16 }
  0x3c   :  { %858 = vmatprep.subr.bf16.mxu1 %v857_v18  ;;  %v863_v37 = vpack.c.bf16 %v233_v33, %v232_v32  ;;  %s871_s18 = scalar_lea.vmem %s572_s16, 16  ;;  %s875_s19 = scalar_lea.vmem %s572_s16, 32 }
  0x3d   :  { %v118_v38 = vmul.f32 %v110_v34, %v110_v34  ;;  %v539_v4 = vld [vmem:[#allocation2] sm:$0xff]  ;;  %p872_p0 = scmp.ne.s32.totalorder %s572_s16, %s871_s18  ;;  %p876_p1 = scmp.lt.s32.totalorder %s572_s16, %s572_s16 }
  0x3e   :  { %828 = vmatpush3.bf16.msra.mxu0 %v827_v25  ;;  %p877_p2 = scmp.lt.s32.totalorder %s875_s19, %s871_s18 }
  0x3f   :  { %860 = vmatpush3.bf16.msra.mxu1 %v859_v27  ;;  %830 = vmatprep.subr.bf16.mxu0 %v829_v28 }
  0x40   :  { %862 = vmatprep.subr.bf16.mxu1 %v861_v31  ;;  %p878_p3 = por %p877_p2, %p876_p1 }
  0x42   :  { %832 = vmatpush3.bf16.msra.mxu0 %v831_v35  ;;  %p879_p4 = pnand %p878_p3, %p872_p0 }
  0x43   :  { %864 = vmatpush3.bf16.msra.mxu1 %v863_v37 }
  0x45   :  { %455 = vmatmul.mubr.f32.vlgmr.msra.gmra.mrb[2].mxu0 %v118_v38 }
  0x46   :  { %525 = vmatmul.mubr.f32.vlgmr.msra.gmra.mrb[2].mxu1 %v120_v39 }
  0xf8   :  { %v629_v41 = vpop.f32.mrb[0].mxu0 }
  0xf9   :  { %v664_v42 = vpop.f32.mrb[0].mxu1  ;;  %v630_v43 = vpop.f32.mrb[1].mxu0 }
  0xfa   :  { %v631_v44 = vadd.f32 %v630_v43, %v629_v41  ;;  %v665_v45 = vpop.f32.mrb[1].mxu1 }
  0xfb   :  { %v666_v46 = vadd.f32 %v665_v45, %v664_v42 }
  0xfd   :  { %v387_v47 = vadd.f32 %v666_v46, %v631_v44 }
 0x118   :  { %v699_v48 = vpop.f32.mrb[2].mxu0 }
 0x119   :  { %v700_v49 = vpop.f32.mrb[3].mxu0  ;;  %v734_v50 = vpop.f32.mrb[2].mxu1 }
 0x11a   :  { %v701_v51 = vadd.f32 %v700_v49, %v699_v48  ;;  %v735_v52 = vpop.f32.mrb[3].mxu1 }
 0x11b   :  { %v736_v53 = vadd.f32 %v735_v52, %v734_v50 }
 0x11c   :  { %v457_v54 = vadd.f32 %v701_v51, %v387_v47 }
 0x11e   :  { %v527_v55 = vadd.f32 %v736_v53, %v457_v54 }
 0x120   :  { %869 = vrsqrt.f32 %v527_v55  ;;  %vm532_vm1 = vcmp.eq.f32.partialorder %v527_v55, inf  ;;  %v535_v58 = vand.u32 2147483648, %v527_v55  ;;  %vm534_vm2 = vcmp.eq.f32.partialorder %v527_v55, 0.0 }
 0x121   :  { %v541_v2 = vmul.f32 %v540_v0, %v527_v55 }
 0x12a   :  { %v870_v56 = vpop.eup %869 }
 0x12b   :  { %v531_v57 = vmul.f32 %v870_v56, %v527_v55 }
 0x12d   :  { %v533_v59 = vsel %vm532_vm1, %v527_v55, %v531_v57 }
 0x12e   :  { %v536_v61 = vsel %vm534_vm2, %v535_v58, %v533_v59 }
 0x12f   :  { %v537_v62 = vsub.f32 2.0, %v536_v61 }
 0x131   :  { %v538_v63 = vmax.f32 %v537_v62, 0.0 }
 0x133   :  { %v542_v1 = vmul.f32 %v538_v63, %v538_v63 }
 0x135   :  { %v543_v3 = vmul.f32 %v542_v1, %v97_v60 }
 0x137   :  { %v544_v5 = vadd.f32 %v543_v3, %v541_v2 }
 0x139   :  { %v545_v6 = vadd.f32 %v544_v5, %v539_v4 }
 0x13b   :  { %547 = vst.msk [vmem:[#allocation2] sm:$0xff] %vm79_vm0, %v545_v6 }
 0x142   :  { %v551_v7 = vld [vmem:[#allocation2] sm:$0xff] }
 0x143   :  { %v552_v8 = vsel %vm79_vm0, %v551_v7, 0.0 }
 0x144   :  { %553 = vadd.xlane.f32.xlu0 %v552_v8 }
 0x1d1   :  { %v554_v9 = vpop.xlane.xlu0 %553 }
 0x1d2   :  { %v555_v10 = vrot.slane %v554_v9, 4 }
 0x1d4   :  { %v556_v11 = vadd.f32 %v555_v10, %v554_v9 }
 0x1d6   :  { %v557_v12 = vrot.slane %v556_v11, 2 }
 0x1d8   :  { %v558_v13 = vadd.f32 %v557_v12, %v556_v11 }
 0x1da   :  { %v559_v14 = vrot.slane %v558_v13, 1 }
 0x1dc   :  { %v560_v15 = vadd.f32 %v559_v14, %v558_v13 }
 0x1de   :  { %865 = vpush %v560_v15 }
 0x20f   :  { %s866_s17 = spop %865 }
 0x210   :  { %v562_v16 = vstv %s866_s17 }
 0x211   :  { %564 = vst.msk [vmem:[#allocation3] sm:$0x1] %vm563_vm3, %v562_v16 }
 0x212   :  { %882 = shalt.err (!%p879_p4)
}
 0x213   :  { %s883_s22 = scalar_lea.hbm %s1376_s4, 16 }
 0x214   :  { %p884_p5 = scmp.ne.s32.totalorder %s1376_s4, %s883_s22  ;;  %p887_p6 = scmp.lt.u32.totalorder %s883_s22, %s1376_s4 }
 0x216   :  { %p889_p7 = pnand %p887_p6, %p884_p5 }
 0x218   :  { %892 = shalt.err (!%p889_p7)
}
 0x219   :  { %574 = dma.vmem_to_hbm [thread:$0]  %s572_s16, 16, %s1376_s4, [#allocation4]  }
 0x21a   :  { %893 = dma.done.wait [#allocation4], 16  }
 0x21b   :  { %894 = vsyncadd [#allocation4], 4294967280 }
 0x21c   :  { %578 = vsyncpa [#allocation4], 1 }

</bundles_post_ra>
